<compile_context>
chip_gen: v6e
topology: v6e:2x2x1
jax: 0.10.0
libtpu: 0.0.40
codegen_flags: <defaults>
</compile_context>

<pallas_src>
import math

import jax
import jax.numpy as jnp
from jax.experimental import pallas as pl
from jax.experimental.pallas import tpu as pltpu

# Vocabulary constants (undefined globals in the original file; fixed deterministically here).
PAD_IDX = 0
BOS_IDX = 1
EOS_IDX = 2
AIR_IDX = 3
LINS_IDX = 4

EMB_SIZE = 48        # forced by `.view(1, -1, 48)` in the reference module
FEAT_DIM = 12        # nn.Linear(12, emb_size)
VOCAB_SIZE = 16

_LANE = 128
_SUBLANE = 8


def _round_up(x, m):
    return (x + m - 1) // m * m


def _token_embedding_kernel(params_ref, feat_ref, out_ref):
    """params_ref: (TP+FP, EP) f32.  Rows [0:TP]  = Embedding(tokens)*sqrt(E) (+ bias on rows 1..S),
                                      Rows [TP:TP+12] = fc.weight^T, zero-padded elsewhere.
    feat_ref:   (TP, FP) f32.  features[0] on rows 1..S / cols 0..12, zeros elsewhere.
    out_ref:    (TP, EP) f32.
    Single MXU matmul + one VPU add; every load/store is a full, unmasked, sublane-aligned tile."""
    tp = out_ref.shape[0]
    base = params_ref[:tp, :]                       # static, sublane-aligned view
    w = params_ref[tp:, :]                          # static, sublane-aligned view
    out_ref[...] = base + jnp.dot(feat_ref[...], w, preferred_element_type=jnp.float32)


def make_token_embedding_forward(emb_table, fc_weight, fc_bias, seq_len):
    """Builds a jitted forward with all parameter-derived operands constant-folded once."""
    V, E = emb_table.shape
    S = int(seq_len)
    T = S + 2
    TP = _round_up(T, _SUBLANE)            # sublane-aligned row count
    EP = _round_up(E, _LANE)               # lane-dense output width (unmasked stores)
    FP = _round_up(FEAT_DIM, _SUBLANE)     # contraction dim padded to a full sublane tile

    # --- static token ids ([BOS] + alternating LINS/AIR + [EOS]) ---
    tok_list = [BOS_IDX] + [AIR_IDX if x % 2 else LINS_IDX for x in range(S)] + [EOS_IDX]
    tokens_i32 = jnp.asarray(tok_list, dtype=jnp.int32)
    # TODO(synk): torch returns int64 tokens; int32 is used here (JAX TPU default integer width).
    tokens_out = tokens_i32.reshape(1, T)

    # --- parameter-only work, done ONCE (hoisted out of the per-call path) ---
    base = emb_table[tokens_i32].astype(jnp.float32) * math.sqrt(float(E))      # (T, E)
    base = base.at[1:1 + S, :].add(fc_bias.astype(jnp.float32))                 # bias on rows 1..S
    params_slab = jnp.zeros((TP + FP, EP), jnp.float32)
    params_slab = params_slab.at[:T, :E].set(base)                              # base rows
    params_slab = params_slab.at[TP:TP + FEAT_DIM, :E].set(
        fc_weight.T.astype(jnp.float32))                                        # W^T rows
    params_slab = jax.block_until_ready(params_slab)                            # materialize once

    vmem_spec = pl.BlockSpec(memory_space=pltpu.MemorySpace.VMEM)
    call = pl.pallas_call(
        _token_embedding_kernel,
        out_shape=jax.ShapeDtypeStruct((TP, EP), jnp.float32),
        in_specs=[vmem_spec, vmem_spec],      # whole-array, no grid, no pipeline machinery
        out_specs=vmem_spec,
    )

    @jax.jit
    def forward(features):
        """features: (B, S, 12) float32 -> (embeddings (1, S+2, E) f32, tokens (1, S+2) i32)."""
        # Only features[0] participates, exactly like the PyTorch loop (embeddings.shape[0] == 1).
        feat_p = jnp.zeros((TP, FP), jnp.float32).at[1:1 + S, :FEAT_DIM].set(
            features[0].astype(jnp.float32))
        out_p = call(params_slab, feat_p)
        # Slice back to the module's contract shape; the padded lane-dense slab could be
        # consumed directly by a fused downstream layer instead.
        return out_p[:T, :E].reshape(1, T, E), tokens_out

    return forward


def _reference(features, emb_table, fc_weight, fc_bias):
    B, S, F = features.shape
    tok_list = [BOS_IDX] + [AIR_IDX if x % 2 else LINS_IDX for x in range(S)] + [EOS_IDX]
    tokens = jnp.asarray(tok_list, dtype=jnp.int32)
    emb = emb_table[tokens] * math.sqrt(float(emb_table.shape[1]))
    proj = features[0] @ fc_weight.T + fc_bias
    emb = emb.at[1:1 + S, :].add(proj)
    return emb.reshape(1, S + 2, -1), tokens.reshape(1, -1)


if __name__ == "__main__":
    key = jax.random.PRNGKey(0)
    k_feat, k_emb, k_w, k_b = jax.random.split(key, 4)

    B, S = 2, 8
    features = jax.random.normal(k_feat, (B, S, FEAT_DIM), dtype=jnp.float32)

    # Deterministic parameter init (shapes match nn.Embedding / nn.Linear in __init__).
    emb_table = jax.random.normal(k_emb, (VOCAB_SIZE, EMB_SIZE), dtype=jnp.float32)
    bound = 1.0 / math.sqrt(FEAT_DIM)
    fc_weight = jax.random.uniform(k_w, (EMB_SIZE, FEAT_DIM), jnp.float32, -bound, bound)
    fc_bias = jax.random.uniform(k_b, (EMB_SIZE,), jnp.float32, -bound, bound)

    forward = make_token_embedding_forward(emb_table, fc_weight, fc_bias, seq_len=S)

    embeddings, tokens = forward(features)
    jax.block_until_ready(embeddings)
    jax.block_until_ready(tokens)

    ref_emb, ref_tok = _reference(features, emb_table, fc_weight, fc_bias)
    assert embeddings.shape == (1, S + 2, EMB_SIZE)
    assert tokens.shape == (1, S + 2)
    assert jnp.allclose(embeddings, ref_emb, atol=1e-4, rtol=1e-4)
    assert jnp.array_equal(tokens, ref_tok)

    print("KERNEL_OK")
</pallas_src>

<mosaic_0001>
module attributes {stable_mosaic.version = 11 : i64} {
  func.func @_token_embedding_kernel(%arg0: memref<32x128xf32, #tpu.memory_space<vmem>>, %arg1: memref<16x16xf32, #tpu.memory_space<vmem>>, %arg2: memref<16x128xf32, #tpu.memory_space<vmem>>) attributes {dimension_semantics = [], scalar_prefetch = 0 : i64, scratch_operands = 0 : i64, tpu.core_type = #tpu.core_type<tc>} {
    %c0 = arith.constant 0 : index
    %c0_0 = arith.constant 0 : index
    %0 = vector.load %arg0[%c0, %c0_0] : memref<32x128xf32, #tpu.memory_space<vmem>>, vector<16x128xf32>
    %c16 = arith.constant 16 : index
    %c0_1 = arith.constant 0 : index
    %1 = vector.load %arg0[%c16, %c0_1] : memref<32x128xf32, #tpu.memory_space<vmem>>, vector<16x128xf32>
    %c0_2 = arith.constant 0 : index
    %c0_3 = arith.constant 0 : index
    %2 = vector.load %arg1[%c0_2, %c0_3] : memref<16x16xf32, #tpu.memory_space<vmem>>, vector<16x16xf32>
    %cst = arith.constant dense<0.000000e+00> : vector<16x128xf32>
    %3 = tpu.matmul %2, %1, %cst {dimension_numbers = #tpu.dot_dimension_numbers<[1], [0], [0], [1], [0, 0, 1, 1], [], []>} : vector<16x16xf32>, vector<16x128xf32>, vector<16x128xf32> -> vector<16x128xf32>
    %4 = arith.addf %0, %3 : vector<16x128xf32>
    %c0_4 = arith.constant 0 : index
    %c0_5 = arith.constant 0 : index
    %5 = vector.load %arg2[%c0_4, %c0_5] : memref<16x128xf32, #tpu.memory_space<vmem>>, vector<16x128xf32>
    tpu.vector_store %arg2[%c0_4, %c0_5], %4 {strides = array<i32>} : memref<16x128xf32, #tpu.memory_space<vmem>>, vector<16x128xf32>,
    return
  }
}

</mosaic_0001>

<bundles_post_ra>
// kernel: forward.1
= control target key start
LH: loop header
LB: loop body
LE: loop exit
PB: predicated region body
PF: predicated region fallthrough
CT: control target
= control target key end

     0   :  { %vm17_vm0 = vcmask 130048   ;;  %s159_s0 = inlined_call_operand.vmem [shape: f32[32,128], index: 0, kind: input, shape index: {}]   ;;  %s160_s1 = inlined_call_operand.vmem [shape: f32[16,16], index: 1, kind: input, shape index: {}]   ;;  %s161_s2 = inlined_call_operand.vmem [shape: f32[16,128], index: 2, kind: output, shape index: {}]  }
   0x1   :  { %v14_v0 = vld [vmem:[%s159_s0 + $0x18] sm:$0xff]  ;;  %v13_v1 = vld [vmem:[%s159_s0 + $0x10] sm:$0xff]  ;;  %v15_v2 = vld [vmem:[%s160_s1] sm:$0xff] }
   0x2   :  { %113 = vmatprep.subr.mxu0 %v14_v0  ;;  %117 = vmatprep.mubr.msk.f32.mxu0 %vm17_vm0, %v15_v2  ;;  %v16_v3 = vld [vmem:[%s160_s1 + $0x8] sm:$0xff]  ;;  %v11_v6 = vld [vmem:[%s159_s0] sm:$0xff] }
   0x3   :  { %114 = vmatpush3.msra.mxu0 %v14_v0  ;;  %v12_v4 = vld [vmem:[%s159_s0 + $0x8] sm:$0xff] }
   0x4   :  { %115 = vmatprep.subr.mxu0 %v13_v1 }
   0x5   :  { %116 = vmatpush3.msra.mxu0 %v13_v1 }
   0x6   :  { %118 = vmatmul.mubr.msk.f32.vlgmr.msra.gmra.mxu0 %vm17_vm0, %v16_v3 }
  0xc6   :  { %v119_v5 = vpop.f32.mrf.mxu0 }
  0xc7   :  { %v100_v7 = vadd.f32 %v119_v5, %v12_v4 }
  0xc8   :  { %v90_v8 = vpop.f32.mrf.mxu0 }
  0xc9   :  { %102 = vst [vmem:[%s161_s2 + $0x8] sm:$0xff] %v100_v7  ;;  %v99_v9 = vadd.f32 %v90_v8, %v11_v6 }
  0xcb   :  { %101 = vst [vmem:[%s161_s2] sm:$0xff] %v99_v9 }

</bundles_post_ra>
